<compile_context>
chip_gen: v6e
topology: v6e:2x2x1
jax: 0.10.0
libtpu: 0.0.40
codegen_flags: <defaults>
</compile_context>

<pallas_src>
import jax
import jax.numpy as jnp
from jax.experimental import pallas as pl
from jax.experimental.pallas import tpu as pltpu

_LANE = 128


def _cdiv(a, b):
    return -(-a // b)


def _round_up(a, b):
    return _cdiv(a, b) * b


# ---------------------------------------------------------------------------
# Kernels.  Block shapes seen by the kernel:
#   pred_ref : (1, C, TR, 128)  logits (original dtype, cast to f32 on read)
#   lbl_ref  : (1, TR, 128)     int32 class indices (-1 marks padded pixels)
#   tgt_ref  : (1, C, TR, 128)  float target probabilities (padding is 0)
#   out_ref  : (1, 1, 8, 128)   per-tile partial sum of the per-pixel loss
# ---------------------------------------------------------------------------
def _ce_index_kernel(pred_ref, lbl_ref, out_ref):
    C = pred_ref.shape[1]
    tr = pred_ref.shape[2]

    # pass 1: per-pixel max over channels (streamed per channel; VPU only).
    m = pred_ref[0, 0].astype(jnp.float32)
    for c in range(1, C):
        m = jnp.maximum(m, pred_ref[0, c].astype(jnp.float32))

    # pass 2: sum-exp + picked logit, streamed per channel.
    lbl = lbl_ref[0]
    se = jnp.zeros_like(m)
    picked = jnp.zeros_like(m)
    for c in range(C):
        z = pred_ref[0, c].astype(jnp.float32) - m
        se = se + jnp.exp(z)
        picked = jnp.where(lbl == c, z, picked)

    # CE = lse - z[label]; padded pixels (label == -1) contribute exactly 0.
    loss = jnp.where(lbl >= 0, jnp.log(se) - picked, 0.0)

    # (TR,128) -> (8,128) partial sum with tile-aligned slab adds (VPU).
    partial = loss[0:8]
    for r in range(8, tr, 8):
        partial = partial + loss[r:r + 8]
    out_ref[0, 0] = partial


def _ce_prob_kernel(pred_ref, tgt_ref, out_ref):
    C = pred_ref.shape[1]
    tr = pred_ref.shape[2]

    m = pred_ref[0, 0].astype(jnp.float32)
    for c in range(1, C):
        m = jnp.maximum(m, pred_ref[0, c].astype(jnp.float32))

    se = jnp.zeros_like(m)
    tsum = jnp.zeros_like(m)
    tz = jnp.zeros_like(m)
    for c in range(C):
        z = pred_ref[0, c].astype(jnp.float32) - m
        t = tgt_ref[0, c].astype(jnp.float32)
        se = se + jnp.exp(z)
        tsum = tsum + t
        tz = tz + t * z

    # CE = lse * sum_c t_c - sum_c t_c z_c  (exact for unnormalized targets;
    # zero-padded pixels have t == 0 so they contribute exactly 0).
    loss = jnp.log(se) * tsum - tz

    partial = loss[0:8]
    for r in range(8, tr, 8):
        partial = partial + loss[r:r + 8]
    out_ref[0, 0] = partial


# ---------------------------------------------------------------------------
# Wrapper: contiguous lane-dense layout + final mean.
# ---------------------------------------------------------------------------
def ce_loss(y_pred, y_true, y_true_sk=None, *, max_tile_rows=512):
    """torch.nn.CrossEntropyLoss() (mean reduction) forward.

    y_pred: (N, C, H, W) logits (any float dtype; kept in HBM as-is).
    y_true: (N, H, W) integer class indices, or (N, C, H, W) probabilities.
    """
    del y_true_sk
    N, C, H, W = y_pred.shape
    P = H * W
    prob_targets = (y_true.ndim == 4)
    if prob_targets:
        assert y_true.shape == y_pred.shape
    else:
        assert y_true.shape == (N, H, W)

    # ---- tile sizing, budgeted for the smallest default scoped-VMEM limit ---
    rows = _cdiv(P, _LANE)
    pred_row_bytes = C * _LANE * jnp.dtype(y_pred.dtype).itemsize
    if prob_targets:
        tgt_row_bytes = C * _LANE * jnp.dtype(y_true.dtype).itemsize
    else:
        tgt_row_bytes = _LANE * 4
    vmem_budget = 10 * 1024 * 1024                  # double-buffered inputs
    tr_vmem = vmem_budget // (2 * (pred_row_bytes + tgt_row_bytes))
    tile_rows = min(max_tile_rows,
                    max(8, (tr_vmem // 8) * 8),
                    _round_up(rows, 8))
    # keep several tiles per batch so a v7x megacore has parallel work.
    min_tiles_per_batch = max(1, _cdiv(8, N))
    tile_rows = min(tile_rows,
                    max(8, _round_up(_cdiv(rows, min_tiles_per_batch), 8)))

    rows_pad = _round_up(rows, tile_rows)
    P_pad = rows_pad * _LANE
    G = rows_pad // tile_rows

    # ---- lane-dense layout: contiguous reshape, pad only the small tail -----
    def pad_last(x, value):
        pad = P_pad - x.shape[-1]
        if pad == 0:
            return x
        cfg = [(0, 0)] * (x.ndim - 1) + [(0, pad)]
        return jnp.pad(x, cfg, constant_values=value)

    xp = pad_last(y_pred.reshape(N, C, P), 0).reshape(N, C, rows_pad, _LANE)

    if prob_targets:
        tgt = pad_last(y_true.reshape(N, C, P), 0).reshape(N, C, rows_pad, _LANE)
        tgt_spec = pl.BlockSpec((1, C, tile_rows, _LANE),
                                lambda n, g: (n, 0, g, 0))
        kernel = _ce_prob_kernel
    else:
        tgt = pad_last(y_true.astype(jnp.int32).reshape(N, P), -1)
        tgt = tgt.reshape(N, rows_pad, _LANE)
        tgt_spec = pl.BlockSpec((1, tile_rows, _LANE),
                                lambda n, g: (n, g, 0))
        kernel = _ce_index_kernel

    partials = pl.pallas_call(
        kernel,
        out_shape=jax.ShapeDtypeStruct((N, G, 8, _LANE), jnp.float32),
        grid_spec=pltpu.PrefetchScalarGridSpec(
            num_scalar_prefetch=0,
            grid=(N, G),
            in_specs=[
                pl.BlockSpec((1, C, tile_rows, _LANE),
                             lambda n, g: (n, 0, g, 0)),
                tgt_spec,
            ],
            out_specs=pl.BlockSpec((1, 1, 8, _LANE),
                                   lambda n, g: (n, g, 0, 0)),
        ),
        compiler_params=pltpu.CompilerParams(
            dimension_semantics=("parallel", "parallel")),
    )(xp, tgt)

    # mean over the real pixels (padding contributes exactly 0 to the sum).
    return jnp.sum(partials) / jnp.float32(N * P)


# ---------------------------------------------------------------------------
# Pure-JAX references (correctness check only).
# ---------------------------------------------------------------------------
def _ref_ce_index(y_pred, labels):
    logp = jax.nn.log_softmax(y_pred, axis=1)
    nll = -jnp.take_along_axis(logp, labels[:, None].astype(jnp.int32), axis=1)[:, 0]
    return jnp.mean(nll)


def _ref_ce_prob(y_pred, t):
    logp = jax.nn.log_softmax(y_pred, axis=1)
    return -jnp.mean(jnp.sum(t * logp, axis=1))


if __name__ == "__main__":
    key = jax.random.PRNGKey(0)
    k1, k2, k3 = jax.random.split(key, 3)

    N, C, H, W = 2, 4, 16, 16
    y_pred = jax.random.normal(k1, (N, C, H, W), dtype=jnp.float32)
    labels = jax.random.randint(k2, (N, H, W), 0, C)

    # class-index target path (standard nn.CrossEntropyLoss usage).
    loss_idx = jax.block_until_ready(ce_loss(y_pred, labels))
    ref_idx = _ref_ce_index(y_pred, labels)
    assert jnp.allclose(loss_idx, ref_idx, rtol=1e-4, atol=1e-6), (loss_idx, ref_idx)

    # probability-target path (also supported by nn.CrossEntropyLoss).
    t_soft = jax.nn.softmax(
        jax.random.normal(k3, (N, C, H, W), jnp.float32), axis=1)
    loss_soft = jax.block_until_ready(ce_loss(y_pred, t_soft))
    ref_soft = _ref_ce_prob(y_pred, t_soft)
    assert jnp.allclose(loss_soft, ref_soft, rtol=1e-4, atol=1e-6), (loss_soft, ref_soft)

    print("KERNEL_OK")
</pallas_src>

<mosaic_0001>
module attributes {stable_mosaic.version = 11 : i64} {
  func.func @_ce_index_kernel(%arg0: i32, %arg1: i32, %arg2: memref<1x4x8x128xf32, #tpu.memory_space<vmem>>, %arg3: memref<1x8x128xi32, #tpu.memory_space<vmem>>, %arg4: memref<1x1x8x128xf32, #tpu.memory_space<vmem>>) attributes {dimension_semantics = [#tpu.dimension_semantics<parallel>, #tpu.dimension_semantics<parallel>], iteration_bounds = array<i64: 2, 1>, scalar_prefetch = 0 : i64, scratch_operands = 0 : i64, tpu.core_type = #tpu.core_type<tc>, window_params = [{transform_indices = @transform_0, window_bounds = array<i64: 1, 4, 8, 128>}, {transform_indices = @transform_1, window_bounds = array<i64: 1, 8, 128>}, {transform_indices = @transform_2, window_bounds = array<i64: 1, 1, 8, 128>}]} {
    %c0 = arith.constant 0 : index
    %c0_0 = arith.constant 0 : index
    %c0_1 = arith.constant 0 : index
    %c0_2 = arith.constant 0 : index
    %0 = vector.load %arg2[%c0, %c0_0, %c0_1, %c0_2] : memref<1x4x8x128xf32, #tpu.memory_space<vmem>>, vector<1x1x8x128xf32>
    %1 = vector.shape_cast %0 : vector<1x1x8x128xf32> to vector<8x128xf32>
    %c0_3 = arith.constant 0 : index
    %c1 = arith.constant 1 : index
    %c0_4 = arith.constant 0 : index
    %c0_5 = arith.constant 0 : index
    %2 = vector.load %arg2[%c0_3, %c1, %c0_4, %c0_5] : memref<1x4x8x128xf32, #tpu.memory_space<vmem>>, vector<1x1x8x128xf32>
    %3 = vector.shape_cast %2 : vector<1x1x8x128xf32> to vector<8x128xf32>
    %4 = arith.maximumf %1, %3 : vector<8x128xf32>
    %c0_6 = arith.constant 0 : index
    %c2 = arith.constant 2 : index
    %c0_7 = arith.constant 0 : index
    %c0_8 = arith.constant 0 : index
    %5 = vector.load %arg2[%c0_6, %c2, %c0_7, %c0_8] : memref<1x4x8x128xf32, #tpu.memory_space<vmem>>, vector<1x1x8x128xf32>
    %6 = vector.shape_cast %5 : vector<1x1x8x128xf32> to vector<8x128xf32>
    %7 = arith.maximumf %4, %6 : vector<8x128xf32>
    %c0_9 = arith.constant 0 : index
    %c3 = arith.constant 3 : index
    %c0_10 = arith.constant 0 : index
    %c0_11 = arith.constant 0 : index
    %8 = vector.load %arg2[%c0_9, %c3, %c0_10, %c0_11] : memref<1x4x8x128xf32, #tpu.memory_space<vmem>>, vector<1x1x8x128xf32>
    %9 = vector.shape_cast %8 : vector<1x1x8x128xf32> to vector<8x128xf32>
    %10 = arith.maximumf %7, %9 : vector<8x128xf32>
    %c0_12 = arith.constant 0 : index
    %c0_13 = arith.constant 0 : index
    %c0_14 = arith.constant 0 : index
    %11 = vector.load %arg3[%c0_12, %c0_13, %c0_14] : memref<1x8x128xi32, #tpu.memory_space<vmem>>, vector<1x8x128xi32>
    %12 = vector.shape_cast %11 : vector<1x8x128xi32> to vector<8x128xi32>
    %cst = arith.constant 0.000000e+00 : f32
    %13 = vector.broadcast %cst : f32 to vector<8x128xf32>
    %cst_15 = arith.constant 0.000000e+00 : f32
    %14 = vector.broadcast %cst_15 : f32 to vector<8x128xf32>
    %c0_16 = arith.constant 0 : index
    %c0_17 = arith.constant 0 : index
    %c0_18 = arith.constant 0 : index
    %c0_19 = arith.constant 0 : index
    %15 = vector.load %arg2[%c0_16, %c0_17, %c0_18, %c0_19] : memref<1x4x8x128xf32, #tpu.memory_space<vmem>>, vector<1x1x8x128xf32>
    %16 = vector.shape_cast %15 : vector<1x1x8x128xf32> to vector<8x128xf32>
    %17 = arith.subf %16, %10 : vector<8x128xf32>
    %18 = math.exp %17 : vector<8x128xf32>
    %19 = arith.addf %13, %18 : vector<8x128xf32>
    %c0_i32 = arith.constant 0 : i32
    %20 = vector.broadcast %c0_i32 : i32 to vector<8x128xi32>
    %21 = arith.cmpi eq, %12, %20 : vector<8x128xi32>
    %22 = arith.select %21, %17, %14 : vector<8x128xi1>, vector<8x128xf32>
    %c0_20 = arith.constant 0 : index
    %c1_21 = arith.constant 1 : index
    %c0_22 = arith.constant 0 : index
    %c0_23 = arith.constant 0 : index
    %23 = vector.load %arg2[%c0_20, %c1_21, %c0_22, %c0_23] : memref<1x4x8x128xf32, #tpu.memory_space<vmem>>, vector<1x1x8x128xf32>
    %24 = vector.shape_cast %23 : vector<1x1x8x128xf32> to vector<8x128xf32>
    %25 = arith.subf %24, %10 : vector<8x128xf32>
    %26 = math.exp %25 : vector<8x128xf32>
    %27 = arith.addf %19, %26 : vector<8x128xf32>
    %c1_i32 = arith.constant 1 : i32
    %28 = vector.broadcast %c1_i32 : i32 to vector<8x128xi32>
    %29 = arith.cmpi eq, %12, %28 : vector<8x128xi32>
    %30 = arith.select %29, %25, %22 : vector<8x128xi1>, vector<8x128xf32>
    %c0_24 = arith.constant 0 : index
    %c2_25 = arith.constant 2 : index
    %c0_26 = arith.constant 0 : index
    %c0_27 = arith.constant 0 : index
    %31 = vector.load %arg2[%c0_24, %c2_25, %c0_26, %c0_27] : memref<1x4x8x128xf32, #tpu.memory_space<vmem>>, vector<1x1x8x128xf32>
    %32 = vector.shape_cast %31 : vector<1x1x8x128xf32> to vector<8x128xf32>
    %33 = arith.subf %32, %10 : vector<8x128xf32>
    %34 = math.exp %33 : vector<8x128xf32>
    %35 = arith.addf %27, %34 : vector<8x128xf32>
    %c2_i32 = arith.constant 2 : i32
    %36 = vector.broadcast %c2_i32 : i32 to vector<8x128xi32>
    %37 = arith.cmpi eq, %12, %36 : vector<8x128xi32>
    %38 = arith.select %37, %33, %30 : vector<8x128xi1>, vector<8x128xf32>
    %c0_28 = arith.constant 0 : index
    %c3_29 = arith.constant 3 : index
    %c0_30 = arith.constant 0 : index
    %c0_31 = arith.constant 0 : index
    %39 = vector.load %arg2[%c0_28, %c3_29, %c0_30, %c0_31] : memref<1x4x8x128xf32, #tpu.memory_space<vmem>>, vector<1x1x8x128xf32>
    %40 = vector.shape_cast %39 : vector<1x1x8x128xf32> to vector<8x128xf32>
    %41 = arith.subf %40, %10 : vector<8x128xf32>
    %42 = math.exp %41 : vector<8x128xf32>
    %43 = arith.addf %35, %42 : vector<8x128xf32>
    %c3_i32 = arith.constant 3 : i32
    %44 = vector.broadcast %c3_i32 : i32 to vector<8x128xi32>
    %45 = arith.cmpi eq, %12, %44 : vector<8x128xi32>
    %46 = arith.select %45, %41, %38 : vector<8x128xi1>, vector<8x128xf32>
    %c0_i32_32 = arith.constant 0 : i32
    %47 = vector.broadcast %c0_i32_32 : i32 to vector<8x128xi32>
    %48 = arith.cmpi sge, %12, %47 : vector<8x128xi32>
    %49 = math.log %43 : vector<8x128xf32>
    %50 = arith.subf %49, %46 : vector<8x128xf32>
    %cst_33 = arith.constant 0.000000e+00 : f32
    %51 = vector.broadcast %cst_33 : f32 to vector<8x128xf32>
    %52 = arith.select %48, %50, %51 : vector<8x128xi1>, vector<8x128xf32>
    %c0_34 = arith.constant 0 : index
    %c0_35 = arith.constant 0 : index
    %c0_36 = arith.constant 0 : index
    %c0_37 = arith.constant 0 : index
    %53 = vector.load %arg4[%c0_34, %c0_35, %c0_36, %c0_37] : memref<1x1x8x128xf32, #tpu.memory_space<vmem>>, vector<1x1x8x128xf32>
    %54 = vector.shape_cast %53 : vector<1x1x8x128xf32> to vector<8x128xf32>
    %55 = vector.shape_cast %52 : vector<8x128xf32> to vector<1x1x8x128xf32>
    tpu.vector_store %arg4[%c0_34, %c0_35, %c0_36, %c0_37], %55 {strides = array<i32>} : memref<1x1x8x128xf32, #tpu.memory_space<vmem>>, vector<1x1x8x128xf32>,
    return
  }
  func.func @transform_0(%arg0: i32, %arg1: i32) -> (i32, i32, i32, i32) {
    %c0_i32 = arith.constant 0 : i32
    %c0_i32_0 = arith.constant 0 : i32
    %c0_i32_1 = arith.constant 0 : i32
    return %arg0, %c0_i32, %arg1, %c0_i32_0 : i32, i32, i32, i32
  }
  func.func @transform_1(%arg0: i32, %arg1: i32) -> (i32, i32, i32) {
    %c0_i32 = arith.constant 0 : i32
    %c0_i32_0 = arith.constant 0 : i32
    return %arg0, %arg1, %c0_i32 : i32, i32, i32
  }
  func.func @transform_2(%arg0: i32, %arg1: i32) -> (i32, i32, i32, i32) {
    %c0_i32 = arith.constant 0 : i32
    %c0_i32_0 = arith.constant 0 : i32
    %c0_i32_1 = arith.constant 0 : i32
    return %arg0, %arg1, %c0_i32, %c0_i32_0 : i32, i32, i32, i32
  }
}

</mosaic_0001>

<bundles_post_ra>
// kernel: tpu_custom_call.1
= control target key start
LH: loop header
LB: loop body
LE: loop exit
PB: predicated region body
PF: predicated region fallthrough
CT: control target
= control target key end

     0   :  { %7 = vsyncpa [#allocation3], 0  ;;  %s814_s0 = inlined_call_operand.hbm [shape: f32[2,4,8,128], index: 0, kind: input, shape index: {}]   ;;  %s815_s1 = inlined_call_operand.hbm [shape: s32[2,8,128], index: 1, kind: input, shape index: {}]   ;;  %s816_s2 = inlined_call_operand.hbm [shape: f32[2,1,8,128], index: 2, kind: output, shape index: {}]  }
   0x1   :  { %9 = vsyncpa [#allocation3 + $0x1], 0 }
   0x2   :  { %10 = vsyncpa [#allocation6], 0 }
   0x3   :  { %12 = vsyncpa [#allocation6 + $0x1], 0 }
   0x4   :  { %13 = vsyncpa [#allocation4], 0 }
   0x5   :  { %15 = vsyncpa [#allocation4 + $0x1], 0  ;;  %s642_s9 = smov 0   ;;  %s644_s10 = smov 0  }
   0x6   :  { %s646_s11 = smov 0   ;;  %s648_s12 = smov 0  }
   0x7   :  { %s650_s13 = smov 0   ;;  %s652_s14 = smov 0  }
   0x8 LB: > { %s380_s15 = sadd.s32 4294967295, %s620_s14   ;;  %s381_s16 = sadd.s32 4294967294, %s620_s14   ;;  %s620_s14 = sphi %s652_s14, %s21_s14   ;;  %s616_s13 = sphi %s650_s13, %s828_s13   ;;  %s612_s12 = sphi %s648_s12, %s827_s12   ;;  %s608_s11 = sphi %s646_s11, %s826_s11   ;;  %s604_s10 = sphi %s644_s10, %s825_s10   ;;  %s600_s9 = sphi %s642_s9, %s824_s9  }
   0x9   : > { %s33_s17 = sadd.s32 1, %s616_s13  ;;  %s42_s18 = sadd.s32 1, %s608_s11 }
   0xa   : > { %p35_p0 = scmp.ge.s32.totalorder %s33_s17, 2  ;;  %p49_p1 = scmp.ne.s32.totalorder %s608_s11, %s604_s10 }
   0xb   : > { %p50_p2 = scmp.eq.s32.totalorder %s620_s14, 0  ;;  %p55_p3 = scmp.ne.s32.totalorder %s604_s10, %s600_s9 }
   0xc   : > { %s830_s17 = smov (%p35_p0, %s33_s17), 0  ;;  %p56_p5 = scmp.eq.s32.totalorder %s380_s15, 0 }
   0xd   : > { %p683_p4 = por %p50_p2, %p49_p1  ;;  %s37_s20 = ssub.s32 %s616_s13, %s830_s17 }
   0xe   : > { %p109_p6 = scmp.eq.s32.totalorder %s380_s15, 1  ;;  %p40_p7 = scmp.eq.s32.totalorder %s37_s20, 0 }
   0xf   : > { %p689_p8 = por %p56_p5, %p55_p3  ;;  %p115_p10 = scmp.eq.s32.totalorder %s381_s16, 1 }
  0x10   : > { %p693_p9 = por %p109_p6, %p49_p1  ;;  %p418_p13 = scmp.lt.s32.totalorder %s620_s14, 2 }
  0x11   : > { %s698_s23 = scalar_select %p40_p7, %s608_s11, %s42_s18  }
  0x12   : > { %p700_p11 = por %p115_p10, %p55_p3  ;;  %s707_s25 = sand.u32 1, %s608_s11  }
  0x13   : > { %s384_s26 = sshll.u32 %s707_s25, 5  ;;  %s400_s27 = sshll.u32 %s616_s13, 9 }
  0x14   : > { %s146_s30 = scalar_lea.hbm %s814_s0, %s400_s27  ;;  %s139_s3 = scalar_lea.vmem [#allocation2], %s384_s26 }
  0x15   : > { %s147_s4 = sshll.u32 %s139_s3, 4  ;;  %p716_p0 = pnand %p418_p13, %p683_p4  ;;  %s148_s4 = int_to_ptr.vmem [resolvable:$true] %s147_s4 }
  0x16   : > { %p389_p1 = scmp.ge.s32.totalorder %s620_s14, 1  ;;  %s136_s6 = scalar_lea.sflag [#allocation3], %s707_s25 }
  0x17   : > { %p482_p2 = pneg %p716_p0  ;;  %s493_s7 = scalar_lea.vmem %s148_s4, 512 }
  0x18   : > { %p494_p3 = scmp.ne.s32.totalorder %s148_s4, %s493_s7  ;;  %s622_s8 = smov [#allocation2]  }
  0x19   : > { %s498_s15 = sshll.u32 %s622_s8, 4  ;;  %s499_s15 = int_to_ptr.vmem [resolvable:$false] %s498_s15 }
  0x1a   : > { %p496_p5 = pnand %p494_p3, %p482_p2  ;;  %s500_s16 = scalar_lea.vmem %s499_s15, 1024 }
  0x1b   : > { %p501_p4 = scmp.lt.s32.totalorder %s148_s4, %s499_s15  ;;  %p502_p7 = scmp.lt.s32.totalorder %s500_s16, %s493_s7 }
  0x1c   : > { %p497_p6 = pneg %p496_p5 }
  0x1d   : > { %p503_p10 = por %p502_p7, %p501_p4 }
  0x1f   : > { %p504_p13 = pnand %p503_p10, %p497_p6 }
  0x21   : > { %507 = shalt.err (!%p504_p13)
}
  0x22   : > { %s623_s18 = smov 128   ;;  %s624_s19 = smov 8  }
  0x23   : > { %410 = dma.hbm_to_vmem [thread:$0]  (!%p716_p0), %s146_s30, 512, %s148_s4, %s136_s6, %s623_s18, %s623_s18, %s624_s19  }
  0x24   : > { %p174_p3 = scmp.lt.s32.totalorder %s620_s14, 3  ;;  %s387_s20 = sshll.u32 %s707_s25, 3 }
  0x25   : > { %s388_s26 = sshll.u32 %s616_s13, 7  ;;  %s161_s7 = scalar_lea.vmem [#allocation5], %s387_s20 }
  0x26   : > { %p734_p5 = pnand %p389_p1, %p174_p3  ;;  %s167_s3 = scalar_lea.hbm %s815_s1, %s388_s26 }
  0x27   : > { %s169_s8 = sshll.u32 %s161_s7, 4  ;;  %s158_s15 = scalar_lea.sflag [#allocation6], %s707_s25  ;;  %s170_s8 = int_to_ptr.vmem [resolvable:$true] %s169_s8 }
  0x28   : > { %s521_s16 = scalar_lea.vmem %s170_s8, 128  ;;  %s625_s30 = smov [#allocation5]  }
  0x29   : > { %p522_p6 = scmp.ne.s32.totalorder %s170_s8, %s521_s16  ;;  %s526_s4 = sshll.u32 %s625_s30, 4  ;;  %s527_s4 = int_to_ptr.vmem [resolvable:$false] %s526_s4 }
  0x2a   : > { %s528_s6 = scalar_lea.vmem %s527_s4, 256  ;;  %p529_p1 = scmp.lt.s32.totalorder %s170_s8, %s527_s4 }
  0x2b   : > { %p524_p4 = pnand %p522_p6, %p482_p2  ;;  %p530_p10 = scmp.lt.s32.totalorder %s528_s6, %s521_s16 }
  0x2d   : > { %p525_p7 = pneg %p524_p4  ;;  %p531_p13 = por %p530_p10, %p529_p1 }
  0x2f   : > { %p532_p3 = pnand %p531_p13, %p525_p7 }
  0x31   : > { %535 = shalt.err (!%p532_p3)
}
  0x32   : > { %413 = dma.hbm_to_vmem [thread:$0]  (!%p716_p0), %s167_s3, 128, %s170_s8, %s158_s15  }
  0x33   : > { %178 = sbr.rel (%p734_p5) target bundleno = 124 (0x7c), region = 28  ;;  %s750_s25 = sand.u32 (!%p734_p5), 1, %s604_s10  }
  0x34   : > { %s390_s18 = sshll.u32 (!%p734_p5), %s750_s25, 5  ;;  %s181_s19 = scalar_lea.sflag (!%p734_p5), [#allocation3], %s750_s25 }
  0x35   : > { %s184_s20 = scalar_lea.vmem (!%p734_p5), [#allocation2], %s390_s18 }
  0x38   : > { %587 = dma.done.wait (%p689_p8), %s181_s19, 512  }
  0x39   : > { %589 = vsyncadd (%p689_p8), %s181_s19, 4294966784  ;;  %s391_s5 = sshll.u32 %s750_s25, 3  ;;  %s190_s26 = scalar_lea.sflag [#allocation6], %s750_s25 }
  0x3a   : > { %s193_s27 = scalar_lea.vmem [#allocation5], %s391_s5 }
  0x3b   : > { %591 = dma.done.wait (%p689_p8), %s190_s26, 128  }
  0x3c   : > { %593 = vsyncadd (%p689_p8), %s190_s26, 4294967168  ;;  %v219_v0 = vld [vmem:[%s184_s20] sm:$0xff]  ;;  %v393_v1 = vld [vmem:[%s184_s20 + $0x8] sm:$0xff]  ;;  %s218_s21 = scalar_lea.vmem [#allocation7], %s391_s5  ;;  %s397_s29 = sshll.u32 %s612_s12, 7 }
  0x3d   : > { %v394_v2 = vld [vmem:[%s184_s20 + $0x10] sm:$0xff]  ;;  %v222_v3 = vmax.f32 %v219_v0, %v393_v1  ;;  %v395_v4 = vld [vmem:[%s184_s20 + $0x18] sm:$0xff]  ;;  %v229_v21 = vld [vmem:[%s193_s27] sm:$0xff]  ;;  %s275_s28 = sshll.u32 %s218_s21, 4  ;;  %s273_s8 = scalar_lea.hbm %s816_s2, %s397_s29  ;;  %s769_s28 = int_to_ptr.vmem [resolvable:$true] %s275_s28 }
  0x3e   : > { %vm234_vm0 = vcmp.eq.s32.totalorder %v229_v21, 0  ;;  %vm240_vm1 = vcmp.eq.s32.totalorder %v229_v21, 1  ;;  %vm246_vm2 = vcmp.eq.s32.totalorder %v229_v21, 2  ;;  %vm252_vm3 = vcmp.eq.s32.totalorder %v229_v21, 3  ;;  %s261_s15 = scalar_lea.sflag [#allocation4], %s750_s25  ;;  %s536_s16 = scalar_lea.vmem %s769_s28, 128 }
  0x3f   : > { %v225_v5 = vmax.f32 %v222_v3, %v394_v2  ;;  %vm254_vm4 = vcmp.ge.s32.totalorder %v229_v21, 0  ;;  %p537_p8 = scmp.ne.s32.totalorder %s769_s28, %s536_s16  ;;  %s626_s12 = smov [#allocation7]  }
  0x40   : > { %s540_s30 = sshll.u32 %s626_s12, 4  ;;  %s541_s30 = int_to_ptr.vmem [resolvable:$false] %s540_s30 }
  0x41   : > { %v228_v6 = vmax.f32 %v225_v5, %v395_v4  ;;  %p538_p0 = pnand %p537_p8, %p693_p9  ;;  %s542_s4 = scalar_lea.vmem %s541_s30, 256 }
  0x42   : > { %p543_p5 = scmp.lt.s32.totalorder %s769_s28, %s541_s30  ;;  %p544_p6 = scmp.lt.s32.totalorder %s542_s4, %s536_s16 }
  0x43   : > { %v230_v7 = vsub.f32 %v219_v0, %v228_v6  ;;  %v236_v8 = vsub.f32 %v393_v1, %v228_v6  ;;  %v242_v9 = vsub.f32 %v394_v2, %v228_v6  ;;  %v248_v10 = vsub.f32 %v395_v4, %v228_v6  ;;  %p539_p2 = pneg %p538_p0 }
  0x44   : > { %p545_p4 = por %p544_p6, %p543_p5 }
  0x45   : > { %v231_v11 = vmul.f32 1.442695, %v230_v7  ;;  %v237_v12 = vmul.f32 1.442695, %v236_v8  ;;  %v243_v13 = vmul.f32 1.442695, %v242_v9 }
  0x46   : > { %v249_v14 = vmul.f32 1.442695, %v248_v10  ;;  %v235_v23 = vsel %vm234_vm0, %v230_v7, 0.0  ;;  %p546_p7 = pnand %p545_p4, %p539_p2 }
  0x47   : > { %470 = vpow2.f32 %v231_v11  ;;  %v241_v24 = vsel %vm240_vm1, %v236_v8, %v235_v23 }
  0x48   : > { %472 = vpow2.f32 %v237_v12  ;;  %v247_v25 = vsel %vm246_vm2, %v242_v9, %v241_v24 }
  0x49   : > { %474 = vpow2.f32 %v243_v13  ;;  %v253_v27 = vsel %vm252_vm3, %v248_v10, %v247_v25 }
  0x4a   : > { %476 = vpow2.f32 %v249_v14 }
  0x54   : > { %v471_v15 = vpop.eup %470 }
  0x55   : > { %v473_v16 = vpop.eup %472 }
  0x56   : > { %v475_v17 = vpop.eup %474  ;;  %v239_v18 = vadd.f32 %v473_v16, %v471_v15 }
  0x57   : > { %v477_v19 = vpop.eup %476 }
  0x58   : > { %v245_v20 = vadd.f32 %v475_v17, %v239_v18 }
  0x5a   : > { %v251_v22 = vadd.f32 %v477_v19, %v245_v20 }
  0x5c   : > { %478 = vlog2.f32 %v251_v22 }
  0x69   : > { %v479_v26 = vpop.eup %478 }
  0x6a   : > { %v256_v28 = vmul.f32 0.6931472, %v479_v26 }
  0x6c   : > { %v257_v29 = vsub.f32 %v256_v28, %v253_v27 }
  0x6e   : > { %v258_v30 = vsel %vm254_vm4, %v257_v29, 0.0 }
  0x6f   : > { %259 = vst [vmem:[%s218_s21] sm:$0xff] %v258_v30 }
  0x70   : > { %549 = shalt.err (!%p546_p7)
}
  0x71   : > { %s550_s6 = scalar_lea.hbm %s273_s8, 128  ;;  %s554_s19 = scalar_lea.hbm %s816_s2, 256 }
  0x72   : > { %p551_p1 = scmp.ne.s32.totalorder %s273_s8, %s550_s6  ;;  %p555_p3 = scmp.lt.s32.totalorder %s273_s8, %s816_s2 }
  0x73   : > { %p556_p8 = scmp.lt.s32.totalorder %s554_s19, %s550_s6 }
  0x74   : > { %p552_p10 = pnand %p551_p1, %p693_p9 }
  0x75   : > { %p557_p0 = por %p556_p8, %p555_p3 }
  0x76   : > { %p553_p13 = pneg %p552_p10 }
  0x78   : > { %p558_p12 = pnand %p557_p0, %p553_p13 }
  0x7a   : > { %561 = shalt.err (!%p558_p12)
}
  0x7b   : > { %405 = dma.vmem_to_hbm [thread:$0]  (%p693_p9), %s769_s28, 128, %s273_s8, %s261_s15  }
  0x7c PF: > { %s287_s26 = sand.u32 1, %s600_s9   ;;  %p823_p2 = scmp.ge.s32.totalorder %s620_s14, 2 }
  0x7d   : > { %s288_s27 = scalar_lea.sflag [#allocation4], %s287_s26 }
  0x7e   : > { %p415_p5 = pnand %p823_p2, %p700_p11 }
  0x80   : > { %p416_p6 = pneg %p415_p5 }
  0x82   : > { %595 = dma.done.wait (%p416_p6), %s288_s27, 128  }
  0x83   : > { %597 = vsyncadd (%p416_p6), %s288_s27, 4294967168  ;;  %s21_s14 = sadd.s32 1, %s620_s14   ;;  %s824_s9 = smov %s604_s10 }
  0x84   : > { %p18_p4 = scmp.ge.s32.totalorder %s21_s14, 4   ;;  %s825_s10 = smov %s608_s11 }
  0x85   : > { %s826_s11 = smov %s698_s23  ;;  %s827_s12 = smov %s616_s13 }
  0x86   : > { %s828_s13 = smov %s830_s17  ;;  %20 = sbr.rel (!%p18_p4) target bundleno = 8 (0x8), region = 89 }
  0x8b   :  { %293 = vsyncpa [#allocation3], 1 }
  0x8c   :  { %295 = vsyncpa [#allocation3 + $0x1], 1 }
  0x8d   :  { %296 = vsyncpa [#allocation6], 1 }
  0x8e   :  { %298 = vsyncpa [#allocation6 + $0x1], 1 }
  0x8f   :  { %299 = vsyncpa [#allocation4], 1 }
  0x90   :  { %301 = vsyncpa [#allocation4 + $0x1], 1 }

</bundles_post_ra>
